<compile_context>
chip_gen: v7x
topology: tpu7x:2x2x1
jax: 0.10.0
libtpu: 0.0.40
codegen_flags: <defaults>
</compile_context>

<pallas_src>
import functools

import jax
import jax.numpy as jnp
from jax.experimental import pallas as pl
from jax.experimental.pallas import tpu as pltpu

_BIAS_LANES = 128  # all bias rows packed into one lane-aligned (L, 128) array


def _apply_activation(h, activation):
    if activation == "sigmoid":
        return jax.nn.sigmoid(h)
    elif activation == "tanh":
        return jnp.tanh(h)
    elif activation == "relu":
        return jnp.maximum(h, 0.0)
    elif activation == "none":
        return h
    else:
        raise Exception("value of activation not valid")


def _mlp_kernel(out_dims, activation, final_activation, *refs):
    """refs layout: x_ref, W0, ..., W_{L-1}, bias_packed_ref, out_ref."""
    num_layers = len(out_dims)
    x_ref = refs[0]
    w_refs = refs[1:1 + num_layers]
    b_all = refs[1 + num_layers][...]          # (L, 128) f32, loaded once
    out_ref = refs[2 + num_layers]

    h = x_ref[...]                             # (tile_b, dimX) f32
    for i in range(num_layers):
        # Weights may be stored bf16 for HBM bandwidth; cheap VPU up-cast,
        # MXU matmul accumulates in f32.
        w = w_refs[i][...].astype(jnp.float32)
        h = jnp.dot(h, w, preferred_element_type=jnp.float32)
        h = h + b_all[i:i + 1, : out_dims[i]]  # static slice, broadcast add (f32 VPU)
        act = activation if i < num_layers - 1 else final_activation
        h = _apply_activation(h, act)
    out_ref[...] = h.astype(out_ref.dtype)


def mlp_forward(x, weights, bias_packed, activation, final_activation, *, tile_b=512):
    """x: (B, C, H, W) f32. weights[i]: (in_i, out_i) (transposed vs nn.Linear).
    bias_packed: (num_layers, 128) f32, row i = bias_i zero-padded in lanes."""
    batch = x.shape[0]
    x_flat = x.reshape(batch, -1)              # glue: x.view(x.shape[0], -1)
    dim_x = x_flat.shape[1]
    out_dims = tuple(int(w.shape[1]) for w in weights)
    dim_y = out_dims[-1]

    # TILE_B ~512 keeps x double-buffering (~4 MiB f32) well under v7x's
    # 32 MiB scoped VMEM while staying near the HBM roofline on v5e/v6e.
    tile_b = min(tile_b, batch)
    grid = (pl.cdiv(batch, tile_b),)           # partial last block is masked by Pallas

    kernel = functools.partial(_mlp_kernel, out_dims, activation, final_activation)

    def const_spec(shape):                     # weight/bias stay VMEM-resident
        return pl.BlockSpec(shape, lambda i: (0, 0))

    in_specs = [pl.BlockSpec((tile_b, dim_x), lambda i: (i, 0))]
    in_specs += [const_spec(tuple(w.shape)) for w in weights]
    in_specs += [const_spec(tuple(bias_packed.shape))]

    y = pl.pallas_call(
        kernel,
        grid=grid,
        out_shape=jax.ShapeDtypeStruct((batch, dim_y), jnp.float32),
        in_specs=in_specs,
        out_specs=pl.BlockSpec((tile_b, dim_y), lambda i: (i, 0)),
        compiler_params=pltpu.CompilerParams(
            dimension_semantics=("parallel",)),   # megacore / 2 TCs on v7x
    )(x_flat, *weights, bias_packed)
    return {"y": y}


def init_params(key, dim_x, hidden_dim, hidden_layers, dim_y):
    """Deterministic init mimicking nn.Linear (uniform +-1/sqrt(fan_in)).
    Weights are stored as (in, out) = transposed PyTorch layout.
    W0 is stored in bf16 (it dominates HBM weight traffic)."""
    weights, biases = [], []
    next_dim = dim_x
    dims = [hidden_dim] * hidden_layers + [dim_y]
    for li, out_dim in enumerate(dims):
        key, kw, kb = jax.random.split(key, 3)
        bound = 1.0 / jnp.sqrt(next_dim)
        w = jax.random.uniform(kw, (next_dim, out_dim), jnp.float32, -bound, bound)
        b = jax.random.uniform(kb, (out_dim,), jnp.float32, -bound, bound)
        if li == 0:
            w = w.astype(jnp.bfloat16)   # halve the dominant weight read
        weights.append(w)
        biases.append(b)
        next_dim = out_dim
    # Pack all biases into a single lane-padded (L, 128) f32 array.
    bias_packed = jnp.zeros((len(dims), _BIAS_LANES), jnp.float32)
    for i, b in enumerate(biases):
        bias_packed = bias_packed.at[i, : b.shape[0]].set(b)
    return weights, bias_packed


if __name__ == "__main__":
    # conf
    B, C, H, W = 2, 4, 16, 16
    dimX = C * H * W            # 1024
    hiddenLayers = 2
    hiddenDim = 32
    dimY = 16
    activation = "relu"
    finalActivation = "none"
    dropout = 0.0               # inference / no dropout

    key = jax.random.PRNGKey(0)
    key, kx = jax.random.split(key)
    x = jax.random.normal(kx, (B, C, H, W), jnp.float32)

    weights, bias_packed = init_params(key, dimX, hiddenDim, hiddenLayers, dimY)

    out = mlp_forward(x, weights, bias_packed, activation, finalActivation)
    y = jax.block_until_ready(out["y"])
    assert y.shape == (B, dimY), y.shape

    # Pure-JAX reference (uses the same bf16-rounded W0 cast to f32, so the
    # comparison stays tight).
    h = x.reshape(B, -1)
    dims_out = [hiddenDim] * hiddenLayers + [dimY]
    for i in range(hiddenLayers + 1):
        w = weights[i].astype(jnp.float32)
        b = bias_packed[i, : dims_out[i]]
        h = h @ w + b
        if i < hiddenLayers:
            h = jnp.maximum(h, 0.0)     # hidden activation = relu
    # finalActivation = 'none'
    assert jnp.allclose(y, h, atol=1e-4, rtol=1e-4), "mismatch vs reference"

    print("KERNEL_OK")
</pallas_src>

<mosaic_0001>
module attributes {stable_mosaic.version = 11 : i64} {
  func.func @_mlp_kernel(%arg0: i32, %arg1: memref<2x1024xf32, #tpu.memory_space<vmem>>, %arg2: memref<1024x32xbf16, #tpu.memory_space<vmem>>, %arg3: memref<32x32xf32, #tpu.memory_space<vmem>>, %arg4: memref<32x16xf32, #tpu.memory_space<vmem>>, %arg5: memref<3x128xf32, #tpu.memory_space<vmem>>, %arg6: memref<2x16xf32, #tpu.memory_space<vmem>>) attributes {dimension_semantics = [#tpu.dimension_semantics<parallel>], iteration_bounds = array<i64: 1>, scalar_prefetch = 0 : i64, scratch_operands = 0 : i64, tpu.core_type = #tpu.core_type<tc>, window_params = [{transform_indices = @transform_0, window_bounds = array<i64: 2, 1024>}, {pipeline_mode = #tpu.pipeline_mode<synchronous>, transform_indices = @transform_1, window_bounds = array<i64: 1024, 32>}, {pipeline_mode = #tpu.pipeline_mode<synchronous>, transform_indices = @transform_2, window_bounds = array<i64: 32, 32>}, {pipeline_mode = #tpu.pipeline_mode<synchronous>, transform_indices = @transform_3, window_bounds = array<i64: 32, 16>}, {pipeline_mode = #tpu.pipeline_mode<synchronous>, transform_indices = @transform_4, window_bounds = array<i64: 3, 128>}, {transform_indices = @transform_5, window_bounds = array<i64: 2, 16>}]} {
    %c0 = arith.constant 0 : index
    %c0_0 = arith.constant 0 : index
    %0 = vector.load %arg5[%c0, %c0_0] : memref<3x128xf32, #tpu.memory_space<vmem>>, vector<3x128xf32>
    %c0_1 = arith.constant 0 : index
    %c0_2 = arith.constant 0 : index
    %1 = vector.load %arg1[%c0_1, %c0_2] : memref<2x1024xf32, #tpu.memory_space<vmem>>, vector<2x1024xf32>
    %c0_3 = arith.constant 0 : index
    %c0_4 = arith.constant 0 : index
    %2 = vector.load %arg2[%c0_3, %c0_4] : memref<1024x32xbf16, #tpu.memory_space<vmem>>, vector<1024x32xbf16>
    %3 = arith.extf %2 : vector<1024x32xbf16> to vector<1024x32xf32>
    %cst = arith.constant dense<0.000000e+00> : vector<2x32xf32>
    %4 = tpu.matmul %1, %3, %cst {dimension_numbers = #tpu.dot_dimension_numbers<[1], [0], [0], [1], [0, 0, 1, 1], [], []>} : vector<2x1024xf32>, vector<1024x32xf32>, vector<2x32xf32> -> vector<2x32xf32>
    %5 = vector.extract_strided_slice %0 {offsets = [0, 0], sizes = [1, 32], strides = [1, 1]} : vector<3x128xf32> to vector<1x32xf32>
    %6 = vector.broadcast %5 : vector<1x32xf32> to vector<2x32xf32>
    %7 = arith.addf %4, %6 : vector<2x32xf32>
    %cst_5 = arith.constant 0.000000e+00 : f32
    %8 = vector.broadcast %cst_5 : f32 to vector<2x32xf32>
    %9 = arith.maximumf %7, %8 : vector<2x32xf32>
    %c0_6 = arith.constant 0 : index
    %c0_7 = arith.constant 0 : index
    %10 = vector.load %arg3[%c0_6, %c0_7] : memref<32x32xf32, #tpu.memory_space<vmem>>, vector<32x32xf32>
    %cst_8 = arith.constant dense<0.000000e+00> : vector<2x32xf32>
    %11 = tpu.matmul %9, %10, %cst_8 {dimension_numbers = #tpu.dot_dimension_numbers<[1], [0], [0], [1], [0, 0, 1, 1], [], []>} : vector<2x32xf32>, vector<32x32xf32>, vector<2x32xf32> -> vector<2x32xf32>
    %12 = vector.extract_strided_slice %0 {offsets = [1, 0], sizes = [1, 32], strides = [1, 1]} : vector<3x128xf32> to vector<1x32xf32>
    %13 = vector.broadcast %12 : vector<1x32xf32> to vector<2x32xf32>
    %14 = arith.addf %11, %13 : vector<2x32xf32>
    %cst_9 = arith.constant 0.000000e+00 : f32
    %15 = vector.broadcast %cst_9 : f32 to vector<2x32xf32>
    %16 = arith.maximumf %14, %15 : vector<2x32xf32>
    %c0_10 = arith.constant 0 : index
    %c0_11 = arith.constant 0 : index
    %17 = vector.load %arg4[%c0_10, %c0_11] : memref<32x16xf32, #tpu.memory_space<vmem>>, vector<32x16xf32>
    %cst_12 = arith.constant dense<0.000000e+00> : vector<2x16xf32>
    %18 = tpu.matmul %16, %17, %cst_12 {dimension_numbers = #tpu.dot_dimension_numbers<[1], [0], [0], [1], [0, 0, 1, 1], [], []>} : vector<2x32xf32>, vector<32x16xf32>, vector<2x16xf32> -> vector<2x16xf32>
    %19 = vector.extract_strided_slice %0 {offsets = [2, 0], sizes = [1, 16], strides = [1, 1]} : vector<3x128xf32> to vector<1x16xf32>
    %20 = vector.broadcast %19 : vector<1x16xf32> to vector<2x16xf32>
    %21 = arith.addf %18, %20 : vector<2x16xf32>
    %c0_13 = arith.constant 0 : index
    %c0_14 = arith.constant 0 : index
    %22 = vector.load %arg6[%c0_13, %c0_14] : memref<2x16xf32, #tpu.memory_space<vmem>>, vector<2x16xf32>
    tpu.vector_store %arg6[%c0_13, %c0_14], %21 {strides = array<i32>} : memref<2x16xf32, #tpu.memory_space<vmem>>, vector<2x16xf32>,
    return
  }
  func.func @transform_0(%arg0: i32) -> (i32, i32) {
    %c0_i32 = arith.constant 0 : i32
    %c0_i32_0 = arith.constant 0 : i32
    return %arg0, %c0_i32 : i32, i32
  }
  func.func @transform_1(%arg0: i32) -> (i32, i32) {
    %c0_i32 = arith.constant 0 : i32
    %c0_i32_0 = arith.constant 0 : i32
    %c0_i32_1 = arith.constant 0 : i32
    return %c0_i32, %c0_i32_0 : i32, i32
  }
  func.func @transform_2(%arg0: i32) -> (i32, i32) {
    %c0_i32 = arith.constant 0 : i32
    %c0_i32_0 = arith.constant 0 : i32
    %c0_i32_1 = arith.constant 0 : i32
    return %c0_i32, %c0_i32_0 : i32, i32
  }
  func.func @transform_3(%arg0: i32) -> (i32, i32) {
    %c0_i32 = arith.constant 0 : i32
    %c0_i32_0 = arith.constant 0 : i32
    %c0_i32_1 = arith.constant 0 : i32
    return %c0_i32, %c0_i32_0 : i32, i32
  }
  func.func @transform_4(%arg0: i32) -> (i32, i32) {
    %c0_i32 = arith.constant 0 : i32
    %c0_i32_0 = arith.constant 0 : i32
    %c0_i32_1 = arith.constant 0 : i32
    return %c0_i32, %c0_i32_0 : i32, i32
  }
  func.func @transform_5(%arg0: i32) -> (i32, i32) {
    %c0_i32 = arith.constant 0 : i32
    %c0_i32_0 = arith.constant 0 : i32
    return %arg0, %c0_i32 : i32, i32
  }
}

</mosaic_0001>

<bundles_post_ra>
// kernel: tpu_custom_call.1
= control target key start
LH: loop header
LB: loop body
LE: loop exit
PB: predicated region body
PF: predicated region fallthrough
CT: control target
= control target key end

     0   :  { %v280_v3 = vlaneseq  ;;  %v1453_v6 = vmov 1983009808   ;;  %s1741_s0 = inlined_call_operand.vmem [shape: f32[2,1024], index: 0, kind: input, shape index: {}]   ;;  %s1742_s1 = inlined_call_operand.vmem [shape: bf16[1024,32], index: 1, kind: input, shape index: {}]   ;;  %s1743_s2 = inlined_call_operand.vmem [shape: f32[32,32], index: 2, kind: input, shape index: {}]   ;;  %s1744_s3 = inlined_call_operand.vmem [shape: f32[32,16], index: 3, kind: input, shape index: {}]   ;;  %s1745_s4 = inlined_call_operand.vmem [shape: f32[3,128], index: 4, kind: input, shape index: {}]   ;;  %s1746_s5 = inlined_call_operand.hbm [shape: f32[2,16], index: 5, kind: output, shape index: {}]  }
   0x1   :  { %v1054_v0 = vld [vmem:[%s1742_s1 + $0x40] sm:$0xff]   ;;  %v1055_v5 = vld [vmem:[%s1742_s1 + $0x48] sm:$0xff]   ;;  %v288_v7 = vunpack.c.l.s4 %v1453_v6  ;;  %v1056_v13 = vld [vmem:[%s1742_s1 + $0x50] sm:$0xff]  }
   0x2   :  { %v792_v1 = vld [vmem:[%s1742_s1] sm:$0xff]   ;;  %1283 = vmatprep.subr.bf16.mxu0 %v1054_v0  ;;  %v1071_v8 = vld [vmem:[%s1742_s1 + $0xc8] sm:$0xff]   ;;  %v1512_v11 = vshrl.u32 %v280_v3, 7  ;;  %v1072_v14 = vld [vmem:[%s1742_s1 + $0xd0] sm:$0xff]  }
   0x3   :  { %v1070_v2 = vld [vmem:[%s1742_s1 + $0xc0] sm:$0xff]   ;;  %1285 = vmatpush3.bf16.msra.mxu0 %v792_v1  ;;  %v1047_v9 = vld [vmem:[%s1742_s1 + $0x8] sm:$0xff]   ;;  %v289_v12 = vunpack.c.0.s8 %v288_v7  ;;  %v1048_v15 = vld [vmem:[%s1742_s1 + $0x10] sm:$0xff]  }
   0x4   :  { %1315 = vmatprep.subr.bf16.mxu1 %v1070_v2  ;;  %v1062_v4 = vld [vmem:[%s1742_s1 + $0x80] sm:$0xff]   ;;  %1287 = vmatprep.subr.bf16.mxu0 %v1055_v5  ;;  %v1063_v10 = vld [vmem:[%s1742_s1 + $0x88] sm:$0xff]   ;;  %v1064_v16 = vld [vmem:[%s1742_s1 + $0x90] sm:$0xff]  }
   0x5   :  { %1317 = vmatpush3.bf16.msra.mxu1 %v1062_v4  ;;  %v292_v17 = vsub.s32 %v289_v12, %v1512_v11  ;;  %v1057_v18 = vld [vmem:[%s1742_s1 + $0x58] sm:$0xff]   ;;  %v22_v20 = vld [vmem:[%s1741_s0] sm:$0xff]  ;;  %v1059_v32 = vld [vmem:[%s1742_s1 + $0x68] sm:$0xff]  }
   0x6   :  { %1319 = vmatprep.subr.bf16.mxu1 %v1071_v8  ;;  %v1073_v19 = vld [vmem:[%s1742_s1 + $0xd8] sm:$0xff]   ;;  %v286_v24 = vcombine.high %v22_v20, %v22_v20  ;;  %v1058_v25 = vld [vmem:[%s1742_s1 + $0x60] sm:$0xff]   ;;  %v1075_v33 = vld [vmem:[%s1742_s1 + $0xe8] sm:$0xff]  }
   0x7   :  { %1289 = vmatpush3.bf16.msra.mxu0 %v1047_v9  ;;  %v1049_v21 = vld [vmem:[%s1742_s1 + $0x18] sm:$0xff]   ;;  %v293_v23 = vrot.slane %v22_v20, %v292_v17  ;;  %v1074_v26 = vld [vmem:[%s1742_s1 + $0xe0] sm:$0xff]   ;;  %v1051_v34 = vld [vmem:[%s1742_s1 + $0x28] sm:$0xff]  }
   0x8   :  { %1291 = vmatprep.subr.bf16.mxu0 %v1056_v13  ;;  %v1065_v22 = vld [vmem:[%s1742_s1 + $0x98] sm:$0xff]   ;;  %v300_v28 = vrot.slane %v286_v24, %v292_v17  ;;  %v1050_v29 = vld [vmem:[%s1742_s1 + $0x20] sm:$0xff]   ;;  %v1067_v35 = vld [vmem:[%s1742_s1 + $0xa8] sm:$0xff]  }
   0x9   :  { %1321 = vmatpush3.bf16.msra.mxu1 %v1063_v10  ;;  %v301_v27 = vcombine.high %v293_v23, %v293_v23  ;;  %v1066_v30 = vld [vmem:[%s1742_s1 + $0xa0] sm:$0xff]   ;;  %v1060_v36 = vld [vmem:[%s1742_s1 + $0x70] sm:$0xff]   ;;  %v23_v38 = vld [vmem:[%s1741_s0 + $0x8] sm:$0xff] }
   0xa   :  { %1323 = vmatprep.subr.bf16.mxu1 %v1072_v14  ;;  %v302_v31 = vcombine.high %v300_v28, %v300_v28  ;;  %v1076_v37 = vld [vmem:[%s1742_s1 + $0xf0] sm:$0xff]  }
   0xb   :  { %1293 = vmatpush3.bf16.msra.mxu0 %v1048_v15  ;;  %392 = vmatprep.mubr.f32.mxu0 %v301_v27 }
   0xc   :  { %1295 = vmatprep.subr.bf16.mxu0 %v1057_v18  ;;  %462 = vmatprep.mubr.f32.mxu1 %v302_v31 }
   0xd   :  { %1325 = vmatpush3.bf16.msra.mxu1 %v1064_v16 }
   0xe   :  { %1327 = vmatprep.subr.bf16.mxu1 %v1073_v19 }
   0xf   :  { %1297 = vmatpush3.bf16.msra.mxu0 %v1049_v21 }
  0x10   :  { %1299 = vmatprep.subr.bf16.mxu0 %v1058_v25 }
  0x11   :  { %1329 = vmatpush3.bf16.msra.mxu1 %v1065_v22 }
  0x12   :  { %1331 = vmatprep.subr.bf16.mxu1 %v1074_v26 }
  0x13   :  { %1301 = vmatpush3.bf16.msra.mxu0 %v1050_v29 }
  0x14   :  { %1303 = vmatprep.subr.bf16.mxu0 %v1059_v32 }
  0x15   :  { %1333 = vmatpush3.bf16.msra.mxu1 %v1066_v30 }
  0x16   :  { %1335 = vmatprep.subr.bf16.mxu1 %v1075_v33 }
  0x17   :  { %1305 = vmatpush3.bf16.msra.mxu0 %v1051_v34 }
  0x19   :  { %1337 = vmatpush3.bf16.msra.mxu1 %v1067_v35 }
  0x1a   :  { %10 = vsyncpa [#allocation3], 0  ;;  %1307 = vmatprep.subr.bf16.mxu0 %v1060_v36  ;;  %v1052_v39 = vld [vmem:[%s1742_s1 + $0x30] sm:$0xff]   ;;  %1339 = vmatprep.subr.bf16.mxu1 %v1076_v37  ;;  %v1061_v41 = vld [vmem:[%s1742_s1 + $0x78] sm:$0xff]   ;;  %v303_v43 = vcombine.high %v23_v38, %v23_v38  ;;  %v1599_v48 = vrot.slane %v23_v38, %v292_v17  ;;  %v1454_v22 = vmov 0.0|0.0   ;;  %vm1455_vm0 = vmmov 0  }
  0x1b   :  { %v1068_v40 = vld [vmem:[%s1742_s1 + $0xb0] sm:$0xff]   ;;  %v1077_v42 = vld [vmem:[%s1742_s1 + $0xf8] sm:$0xff]   ;;  %1309 = vmatpush3.bf16.msra.mxu0 %v1052_v39  ;;  %v1086_v46 = vld [vmem:[%s1742_s1 + $0x140] sm:$0xff]   ;;  %v1456_v26 = vmov 0.0   ;;  %v282_v30 = vsub.s32 0, %v1512_v11  ;;  %vm617_vm1 = vcmask 261120  }
  0x1c   :  { %1311 = vmatprep.subr.bf16.mxu0 %v1061_v41  ;;  %v1053_v44 = vld [vmem:[%s1742_s1 + $0x38] sm:$0xff]   ;;  %v1102_v47 = vld [vmem:[%s1742_s1 + $0x1c0] sm:$0xff]   ;;  %v1601_v49 = vrot.slane %v303_v43, %v292_v17  ;;  %v1087_v52 = vld [vmem:[%s1742_s1 + $0x148] sm:$0xff]   ;;  %v318_v54 = vcombine.high %v1599_v48, %v1599_v48  ;;  %s1457_s11 = smov [#allocation2]   ;;  %vm773_vm2 = vcmask 123904  }
  0x1d   :  { %1341 = vmatpush3.bf16.msra.mxu1 %v1068_v40  ;;  %v1069_v45 = vld [vmem:[%s1742_s1 + $0xb8] sm:$0xff]   ;;  %v1078_v50 = vld [vmem:[%s1742_s1 + $0x100] sm:$0xff]   ;;  %v1103_v53 = vld [vmem:[%s1742_s1 + $0x1c8] sm:$0xff]   ;;  %s781_s12 = sshll.u32 %s1457_s11, 4  ;;  %s782_s12 = int_to_ptr.vmem [resolvable:$true] %s781_s12 }
  0x1e   :  { %1343 = vmatprep.subr.bf16.mxu1 %v1077_v42  ;;  %v1094_v51 = vld [vmem:[%s1742_s1 + $0x180] sm:$0xff]   ;;  %v319_v55 = vcombine.high %v1601_v49, %v1601_v49  ;;  %v1079_v56 = vld [vmem:[%s1742_s1 + $0x108] sm:$0xff]   ;;  %v1088_v58 = vld [vmem:[%s1742_s1 + $0x150] sm:$0xff]   ;;  %p1434_p1 = scmp.lt.s32.totalorder %s782_s12, %s782_s12 }
  0x1f   :  { %1313 = vmatpush3.bf16.msra.mxu0 %v1053_v44  ;;  %v1095_v57 = vld [vmem:[%s1742_s1 + $0x188] sm:$0xff]   ;;  %v1104_v59 = vld [vmem:[%s1742_s1 + $0x1d0] sm:$0xff]   ;;  %v1089_v62 = vld [vmem:[%s1742_s1 + $0x158] sm:$0xff]  }
  0x20   :  { %1347 = vmatprep.subr.bf16.mxu0 %v1086_v46  ;;  %v1080_v60 = vld [vmem:[%s1742_s1 + $0x110] sm:$0xff]   ;;  %v1105_v63 = vld [vmem:[%s1742_s1 + $0x1d8] sm:$0xff]   ;;  %v1090_v2 = vld [vmem:[%s1742_s1 + $0x160] sm:$0xff]  }
  0x21   :  { %1345 = vmatpush3.bf16.msra.mxu1 %v1069_v45  ;;  %v1096_v61 = vld [vmem:[%s1742_s1 + $0x190] sm:$0xff]   ;;  %v1081_v0 = vld [vmem:[%s1742_s1 + $0x118] sm:$0xff]   ;;  %v1106_v3 = vld [vmem:[%s1742_s1 + $0x1e0] sm:$0xff]  }
  0x22   :  { %1379 = vmatprep.subr.bf16.mxu1 %v1102_v47  ;;  %393 = vmatmul.mubr.f32.vlgmr.msra.gmra.mrb[0].mxu0 %v293_v23  ;;  %v1097_v1 = vld [vmem:[%s1742_s1 + $0x198] sm:$0xff]   ;;  %v1082_v4 = vld [vmem:[%s1742_s1 + $0x120] sm:$0xff]   ;;  %v1091_v6 = vld [vmem:[%s1742_s1 + $0x168] sm:$0xff]  }
  0x23   :  { %1349 = vmatpush3.bf16.msra.mxu0 %v1078_v50  ;;  %532 = vmatprep.mubr.f32.mxu0 %v318_v54  ;;  %v1098_v5 = vld [vmem:[%s1742_s1 + $0x1a0] sm:$0xff]   ;;  %v1107_v7 = vld [vmem:[%s1742_s1 + $0x1e8] sm:$0xff]   ;;  %v1092_v10 = vld [vmem:[%s1742_s1 + $0x170] sm:$0xff]  }
  0x24   :  { %463 = vmatmul.mubr.f32.vlgmr.msra.gmra.mrb[0].mxu1 %v300_v28  ;;  %1351 = vmatprep.subr.bf16.mxu0 %v1087_v52  ;;  %v1083_v8 = vld [vmem:[%s1742_s1 + $0x128] sm:$0xff]   ;;  %v1108_v12 = vld [vmem:[%s1742_s1 + $0x1f0] sm:$0xff]   ;;  %v1093_v15 = vld [vmem:[%s1742_s1 + $0x178] sm:$0xff]  }
  0x25   :  { %1381 = vmatpush3.bf16.msra.mxu1 %v1094_v51  ;;  %602 = vmatprep.mubr.f32.mxu1 %v319_v55  ;;  %v1099_v9 = vld [vmem:[%s1742_s1 + $0x1a8] sm:$0xff]   ;;  %v1084_v13 = vld [vmem:[%s1742_s1 + $0x130] sm:$0xff]   ;;  %v1109_v16 = vld [vmem:[%s1742_s1 + $0x1f8] sm:$0xff]  }
  0x26   :  { %1383 = vmatprep.subr.bf16.mxu1 %v1103_v53  ;;  %v1100_v14 = vld [vmem:[%s1742_s1 + $0x1b0] sm:$0xff]   ;;  %v1085_v17 = vld [vmem:[%s1742_s1 + $0x138] sm:$0xff]   ;;  %v609_v19 = vld [vmem:[%s1743_s2] sm:$0xff]  ;;  %v615_v53 = vsub.s32 1, %v1512_v11 }
  0x27   :  { %1353 = vmatpush3.bf16.msra.mxu0 %v1079_v56  ;;  %v1101_v18 = vld [vmem:[%s1742_s1 + $0x1b8] sm:$0xff]   ;;  %v610_v20 = vld [vmem:[%s1743_s2 + $0x8] sm:$0xff]  ;;  %v611_v23 = vld [vmem:[%s1743_s2 + $0x10] sm:$0xff] }
  0x28   :  { %1355 = vmatprep.subr.bf16.mxu0 %v1088_v58  ;;  %v1411_v21 = vpack.c.bf16 %v610_v20, %v609_v19  ;;  %v612_v24 = vld [vmem:[%s1743_s2 + $0x18] sm:$0xff]  ;;  %v692_v27 = vld [vmem:[%s1744_s3] sm:$0xff]  ;;  %v693_v28 = vld [vmem:[%s1744_s3 + $0x8] sm:$0xff] }
  0x29   :  { %1385 = vmatpush3.bf16.msra.mxu1 %v1095_v57  ;;  %v1414_v25 = vpack.c.bf16 %v612_v24, %v611_v23  ;;  %v1417_v29 = vpack.c.bf16 %v693_v28, %v692_v27  ;;  %v21_v31 = vld [vmem:[%s1745_s4] sm:$0x7]  ;;  %v694_v50 = vld [vmem:[%s1744_s3 + $0x10] sm:$0xff]  ;;  %v695_v51 = vld [vmem:[%s1744_s3 + $0x18] sm:$0xff]  ;;  %s1429_s3 = scalar_lea.vmem %s782_s12, 32 }
  0x2a   :  { %1387 = vmatprep.subr.bf16.mxu1 %v1104_v59  ;;  %v283_v33 = vrot.slane %v21_v31, %v282_v30  ;;  %v1420_v52 = vpack.c.bf16 %v695_v51, %v694_v50  ;;  %v616_v54 = vrot.slane %v21_v31, %v615_v53  ;;  %v698_v59 = vsub.s32 2, %v1512_v11  ;;  %p1430_p0 = scmp.ne.s32.totalorder %s782_s12, %s1429_s3  ;;  %p1435_p2 = scmp.lt.s32.totalorder %s1429_s3, %s1429_s3 }
  0x2b   :  { %1357 = vmatpush3.bf16.msra.mxu0 %v1080_v60 }
  0x2c   :  { %1359 = vmatprep.subr.bf16.mxu0 %v1089_v62  ;;  %v699_v60 = vrot.slane %v21_v31, %v698_v59  ;;  %p1436_p3 = por %p1435_p2, %p1434_p1 }
  0x2d   :  { %1389 = vmatpush3.bf16.msra.mxu1 %v1096_v61 }
  0x2e   :  { %1391 = vmatprep.subr.bf16.mxu1 %v1105_v63  ;;  %p1437_p4 = pnand %p1436_p3, %p1430_p0 }
  0x2f   :  { %1361 = vmatpush3.bf16.msra.mxu0 %v1081_v0 }
  0x30   :  { %1363 = vmatprep.subr.bf16.mxu0 %v1090_v2 }
  0x31   :  { %1393 = vmatpush3.bf16.msra.mxu1 %v1097_v1 }
  0x32   :  { %1395 = vmatprep.subr.bf16.mxu1 %v1106_v3 }
  0x33   :  { %1365 = vmatpush3.bf16.msra.mxu0 %v1082_v4 }
  0x34   :  { %1367 = vmatprep.subr.bf16.mxu0 %v1091_v6 }
  0x35   :  { %1397 = vmatpush3.bf16.msra.mxu1 %v1098_v5 }
  0x36   :  { %1399 = vmatprep.subr.bf16.mxu1 %v1107_v7 }
  0x37   :  { %1369 = vmatpush3.bf16.msra.mxu0 %v1083_v8 }
  0x38   :  { %1371 = vmatprep.subr.bf16.mxu0 %v1092_v10 }
  0x39   :  { %1401 = vmatpush3.bf16.msra.mxu1 %v1099_v9 }
  0x3a   :  { %1403 = vmatprep.subr.bf16.mxu1 %v1108_v12 }
  0x3b   :  { %1373 = vmatpush3.bf16.msra.mxu0 %v1084_v13 }
  0x3c   :  { %1375 = vmatprep.subr.bf16.mxu0 %v1093_v15 }
  0x3d   :  { %1405 = vmatpush3.bf16.msra.mxu1 %v1100_v14 }
  0x3e   :  { %1407 = vmatprep.subr.bf16.mxu1 %v1109_v16 }
  0x3f   :  { %1377 = vmatpush3.bf16.msra.mxu0 %v1085_v17 }
  0x40   :  { %1410 = vmatprep.subr.bf16.mxu0 %v1454_v22 }
  0x41   :  { %1409 = vmatpush3.bf16.msra.mxu1 %v1101_v18 }
  0x42   :  { %533 = vmatmul.mubr.f32.vlgmr.msra.gmra.mrb[2].mxu0 %v1599_v48  ;;  %1416 = vmatprep.subr.bf16.mxu1 %v1454_v22 }
  0x43   :  { %1412 = vmatpush3.bf16.msra.mxu0 %v1411_v21  ;;  %1268 = vmatprep.mubr.msk.f32.mxu0 %vm1455_vm0, %v1456_v26 }
  0x44   :  { %603 = vmatmul.mubr.f32.vlgmr.msra.gmra.mrb[2].mxu1 %v1601_v49  ;;  %1413 = vmatprep.subr.bf16.mxu0 %v1454_v22 }
  0x45   :  { %1279 = vmatprep.mubr.msk.f32.mxu1 %vm1455_vm0, %v1456_v26  ;;  %1418 = vmatpush3.bf16.msra.mxu1 %v1417_v29 }
  0x46   :  { %1419 = vmatprep.subr.bf16.mxu1 %v1454_v22 }
  0x47   :  { %1415 = vmatpush3.bf16.msra.mxu0 %v1414_v25 }
  0x49   :  { %1421 = vmatpush3.bf16.msra.mxu1 %v1420_v52 }
  0xf5   :  { %v1142_v32 = vpop.f32.mrb[0].mxu0 }
  0xf6   :  { %v1143_v35 = vpop.f32.mrb[1].mxu0 }
  0xf7   :  { %v1177_v34 = vpop.f32.mrb[0].mxu1  ;;  %v1144_v37 = vadd.f32 %v1143_v35, %v1142_v32 }
  0xf8   :  { %v1178_v36 = vpop.f32.mrb[1].mxu1 }
  0xf9   :  { %v1179_v38 = vadd.f32 %v1178_v36, %v1177_v34  ;;  %v395_v39 = vadd.f32 %v1144_v37, %v283_v33 }
  0xfb   :  { %v465_v40 = vadd.f32 %v1179_v38, %v395_v39 }
 0x115   :  { %v1212_v41 = vpop.f32.mrb[2].mxu0 }
 0x116   :  { %v1213_v43 = vpop.f32.mrb[3].mxu0 }
 0x117   :  { %v1247_v42 = vpop.f32.mrb[2].mxu1  ;;  %v1214_v45 = vadd.f32 %v1213_v43, %v1212_v41 }
 0x118   :  { %v1248_v44 = vpop.f32.mrb[3].mxu1 }
 0x119   :  { %v1249_v46 = vadd.f32 %v1248_v44, %v1247_v42  ;;  %v535_v47 = vadd.f32 %v1214_v45, %v465_v40 }
 0x11b   :  { %v605_v48 = vadd.f32 %v1249_v46, %v535_v47 }
 0x11d   :  { %v608_v49 = vmax.f32 %v605_v48, 0.0 }
 0x11f   :  { %1269 = vmatmul.mubr.msk.f32.vlgmr.msra.gmra.mrb[4].mxu0 %vm617_vm1, %v608_v49 }
 0x1f2   :  { %v687_v55 = vpop.f32.mrb[4].mxu0 }
 0x1f3   :  { %v688_v56 = vadd.f32 %v687_v55, %v616_v54  ;;  %v1270_v57 = vpop.f32.mrb[5].mxu0 }
 0x1f5   :  { %v691_v58 = vmax.f32 %v688_v56, 0.0 }
 0x1f7   :  { %1280 = vmatmul.mubr.msk.f32.vlgmr.msra.gmra.mrb[4].mxu1 %vm617_vm1, %v691_v58 }
 0x2ca   :  { %v769_v61 = vpop.f32.mrb[4].mxu1 }
 0x2cb   :  { %v770_v62 = vadd.f32 %v769_v61, %v699_v60  ;;  %v1281_v63 = vpop.f32.mrb[5].mxu1 }
 0x2cd   :  { %774 = vst.msk [vmem:[#allocation2] sm:$0x3] %vm773_vm2, %v770_v62 }
 0x2ce   :  { %1440 = shalt.err (!%p1437_p4)
}
 0x2cf   :  { %s1441_s15 = scalar_lea.hbm %s1746_s5, 32 }
 0x2d0   :  { %p1442_p5 = scmp.ne.s32.totalorder %s1746_s5, %s1441_s15  ;;  %p1445_p6 = scmp.lt.u32.totalorder %s1441_s15, %s1746_s5 }
 0x2d2   :  { %p1447_p7 = pnand %p1445_p6, %p1442_p5 }
 0x2d4   :  { %1450 = shalt.err (!%p1447_p7)
}
 0x2d5   :  { %784 = dma.vmem_to_hbm [thread:$0]  %s782_s12, 32, %s1746_s5, [#allocation3]  }
 0x2d6   :  { %1451 = dma.done.wait [#allocation3], 32  }
 0x2d7   :  { %1452 = vsyncadd [#allocation3], 4294967264 }
 0x2d8   :  { %788 = vsyncpa [#allocation3], 1 }

</bundles_post_ra>
